<compile_context>
chip_gen: v7x
topology: tpu7x:2x2x1
jax: 0.10.0
libtpu: 0.0.40
codegen_flags: <defaults>
</compile_context>

<pallas_src>
import functools

import jax
import jax.numpy as jnp
from jax.experimental import pallas as pl
from jax.experimental.pallas import tpu as pltpu


def _round_up(x, k):
    return -(-x // k) * k


def _kkt_kernel(x_ref, lam_ref, a_ref, b_ref, c_ref, out_ref, *, weights):
    """One grid step == TB batch problems.

    Ref shapes (VMEM tiles):
      x_ref   : (TB, n)        -> x_hat rows
      lam_ref : (TB, m)        -> lambda_hat rows
      a_ref   : (TB, m, n)     -> A blocks
      b_ref   : (TB, m)
      c_ref   : (1, n) shared  or  (TB, n) per-batch
      out_ref : (1, 1, TB)     -> per-batch losses (lane-dense row)
    """
    w_primal, w_dual, w_station, w_comp = weights

    x = x_ref[...]          # (TB, n)
    lam = lam_ref[...]      # (TB, m)
    a = a_ref[...]          # (TB, m, n)
    bvec = b_ref[...]       # (TB, m)
    cvec = c_ref[...]       # (1, n) or (TB, n)

    # Batched mat-vecs on the VPU/XLU (an M=1 MXU matmul would be ~idle):
    #   Ax[b, i]          = sum_j A[b, i, j] * x[b, j]
    #   (A^T lam)[b, j]   = sum_i A[b, i, j] * lam[b, i]
    ax = jnp.sum(a * x[:, None, :], axis=2)            # (TB, m)
    at_lambda = jnp.sum(a * lam[:, :, None], axis=1)   # (TB, n)

    primal_res = ax - bvec                              # (TB, m)
    relu_pr = jnp.maximum(primal_res, 0.0)
    primal_term = jnp.mean(relu_pr * relu_pr, axis=1)   # (TB,)  /m (true m)

    relu_neg_lam = jnp.maximum(-lam, 0.0)
    dual_term = jnp.mean(relu_neg_lam * relu_neg_lam, axis=1)   # (TB,)

    station_res = cvec + at_lambda                      # (TB, n)
    station_term = jnp.mean(station_res * station_res, axis=1)  # (TB,) /n

    comp_res = lam * primal_res
    comp_term = jnp.mean(comp_res * comp_res, axis=1)   # (TB,)

    loss = (w_primal * primal_term + w_dual * dual_term
            + w_station * station_term + w_comp * comp_term)    # (TB,)

    out_ref[...] = loss[None, None, :]                  # (1, 1, TB)


def _choose_block_b(B, m, n, a_buf_budget_bytes=6 * 1024 * 1024):
    """Pick TB so a double-buffered A block stays within a VMEM budget."""
    m_pad = _round_up(max(m, 1), 8)
    n_pad = _round_up(max(n, 1), 128)
    per_row_bytes = m_pad * n_pad * 4
    tb = max(8, a_buf_budget_bytes // per_row_bytes)
    tb = min(tb, 512, _round_up(B, 8))
    if tb >= 128:
        tb = (tb // 128) * 128          # lane-dense output rows
    else:
        tb = max(8, (tb // 8) * 8)      # at least sublane-dense
    return int(tb)


def kkt_loss(y_pred, A, b, c, *, m, n,
             w_primal=0.1, w_dual=0.1, w_station=0.6, w_comp=0.2,
             reduction="mean", block_b=None):
    if reduction not in {"mean", "sum", "none"}:
        raise ValueError("reduction must be 'mean', 'sum', or 'none'")
    B = y_pred.shape[0]
    if y_pred.shape[1] != n + m:
        raise RuntimeError(
            f"y_pred second dim={y_pred.shape[1]} but expected {n + m}")

    tb = int(block_b) if block_b is not None else _choose_block_b(B, m, n)
    num_blocks = (B + tb - 1) // tb
    b_pad = num_blocks * tb
    pad = b_pad - B

    x_hat = y_pred[:, :n].astype(jnp.float32)      # (B, n)
    lam_hat = y_pred[:, n:].astype(jnp.float32)    # (B, m)
    a_f = A.astype(jnp.float32)                    # (B, m, n)
    b_f = b.astype(jnp.float32)                    # (B, m)

    if pad:
        x_hat = jnp.pad(x_hat, ((0, pad), (0, 0)))
        lam_hat = jnp.pad(lam_hat, ((0, pad), (0, 0)))
        a_f = jnp.pad(a_f, ((0, pad), (0, 0), (0, 0)))
        b_f = jnp.pad(b_f, ((0, pad), (0, 0)))

    if c.ndim == 2:
        c_f = c.astype(jnp.float32)
        if pad:
            c_f = jnp.pad(c_f, ((0, pad), (0, 0)))
        c_spec = pl.BlockSpec((tb, n), lambda i: (i, 0))
    else:
        # Shared cost vector: single (1, n) block, re-used every grid step
        # (constant block index -> no HBM broadcast, no per-step re-fetch).
        c_f = c.astype(jnp.float32).reshape(1, n)
        c_spec = pl.BlockSpec((1, n), lambda i: (0, 0))

    kernel = functools.partial(
        _kkt_kernel,
        weights=(float(w_primal), float(w_dual),
                 float(w_station), float(w_comp)))

    loss_blocks = pl.pallas_call(
        kernel,
        out_shape=jax.ShapeDtypeStruct((num_blocks, 1, tb), jnp.float32),
        grid=(num_blocks,),
        in_specs=[
            pl.BlockSpec((tb, n), lambda i: (i, 0)),        # x_hat
            pl.BlockSpec((tb, m), lambda i: (i, 0)),        # lambda_hat
            pl.BlockSpec((tb, m, n), lambda i: (i, 0, 0)),  # A
            pl.BlockSpec((tb, m), lambda i: (i, 0)),        # b
            c_spec,                                         # c
        ],
        out_specs=pl.BlockSpec((1, 1, tb), lambda i: (i, 0, 0)),
        compiler_params=pltpu.CompilerParams(
            dimension_semantics=("parallel",),
            vmem_limit_bytes=48 * 1024 * 1024),
    )(x_hat, lam_hat, a_f, b_f, c_f)

    loss_vec = loss_blocks.reshape(b_pad)[:B]   # drop padded tail rows
    if reduction == "mean":
        return loss_vec.mean()
    if reduction == "sum":
        return loss_vec.sum()
    return loss_vec


def _kkt_loss_ref(y_pred, A, b, c, *, m, n,
                  w_primal=0.1, w_dual=0.1, w_station=0.6, w_comp=0.2,
                  reduction="mean"):
    """Pure-JAX reference mirroring the PyTorch forward."""
    B = y_pred.shape[0]
    x_hat = y_pred[:, :n]
    lam_hat = y_pred[:, n:]
    Ax = jnp.einsum("bmn,bn->bm", A, x_hat)
    c_exp = c if c.ndim == 2 else jnp.broadcast_to(c[None, :], (B, n))
    primal_res = Ax - b
    primal_term = jnp.mean(jnp.maximum(primal_res, 0.0) ** 2, axis=1)
    dual_term = jnp.mean(jnp.maximum(-lam_hat, 0.0) ** 2, axis=1)
    At_lambda = jnp.einsum("bmn,bm->bn", A, lam_hat)
    station_term = jnp.mean((c_exp + At_lambda) ** 2, axis=1)
    comp_term = jnp.mean((lam_hat * primal_res) ** 2, axis=1)
    loss_vec = (w_primal * primal_term + w_dual * dual_term
                + w_station * station_term + w_comp * comp_term)
    if reduction == "mean":
        return loss_vec.mean()
    if reduction == "sum":
        return loss_vec.sum()
    return loss_vec


if __name__ == "__main__":
    m, n = 8, 16

    # Case 1: shared 1-D c, 'mean' reduction, tiny batch.
    B = 2
    key = jax.random.PRNGKey(0)
    k1, k2, k3, k4 = jax.random.split(key, 4)
    y_pred = jax.random.normal(k1, (B, n + m), dtype=jnp.float32)
    A = jax.random.normal(k2, (B, m, n), dtype=jnp.float32)
    b = jax.random.normal(k3, (B, m), dtype=jnp.float32)
    c = jax.random.normal(k4, (n,), dtype=jnp.float32)

    out = jax.block_until_ready(kkt_loss(y_pred, A, b, c, m=m, n=n,
                                         reduction="mean"))
    ref = _kkt_loss_ref(y_pred, A, b, c, m=m, n=n, reduction="mean")
    assert jnp.allclose(out, ref, rtol=1e-5, atol=1e-5), (out, ref)

    # Case 2: per-batch 2-D c, ragged tail (B % TB != 0), multi-step grid,
    # 'none' reduction.
    B2 = 20
    k5, k6, k7, k8 = jax.random.split(jax.random.PRNGKey(1), 4)
    y2 = jax.random.normal(k5, (B2, n + m), dtype=jnp.float32)
    A2 = jax.random.normal(k6, (B2, m, n), dtype=jnp.float32)
    b2 = jax.random.normal(k7, (B2, m), dtype=jnp.float32)
    c2 = jax.random.normal(k8, (B2, n), dtype=jnp.float32)

    out2 = jax.block_until_ready(
        kkt_loss(y2, A2, b2, c2, m=m, n=n, reduction="none", block_b=8))
    ref2 = _kkt_loss_ref(y2, A2, b2, c2, m=m, n=n, reduction="none")
    assert jnp.allclose(out2, ref2, rtol=1e-5, atol=1e-5), (out2, ref2)

    # TODO(synk): optionally stream A as bfloat16 to halve HBM traffic once
    # numerics tolerance is confirmed for the target workload.
    print("KERNEL_OK")
</pallas_src>

<mosaic_0001>
module attributes {stable_mosaic.version = 11 : i64} {
  func.func @_kkt_kernel(%arg0: i32, %arg1: memref<8x16xf32, #tpu.memory_space<vmem>>, %arg2: memref<8x8xf32, #tpu.memory_space<vmem>>, %arg3: memref<8x8x16xf32, #tpu.memory_space<vmem>>, %arg4: memref<8x8xf32, #tpu.memory_space<vmem>>, %arg5: memref<1x16xf32, #tpu.memory_space<vmem>>, %arg6: memref<1x1x8xf32, #tpu.memory_space<vmem>>) attributes {dimension_semantics = [#tpu.dimension_semantics<parallel>], iteration_bounds = array<i64: 1>, scalar_prefetch = 0 : i64, scratch_operands = 0 : i64, tpu.core_type = #tpu.core_type<tc>, window_params = [{transform_indices = @transform_0, window_bounds = array<i64: 8, 16>}, {transform_indices = @transform_1, window_bounds = array<i64: 8, 8>}, {transform_indices = @transform_2, window_bounds = array<i64: 8, 8, 16>}, {transform_indices = @transform_3, window_bounds = array<i64: 8, 8>}, {pipeline_mode = #tpu.pipeline_mode<synchronous>, transform_indices = @transform_4, window_bounds = array<i64: 1, 16>}, {transform_indices = @transform_5, window_bounds = array<i64: 1, 1, 8>}]} {
    %c0 = arith.constant 0 : index
    %c0_0 = arith.constant 0 : index
    %0 = vector.load %arg1[%c0, %c0_0] : memref<8x16xf32, #tpu.memory_space<vmem>>, vector<8x16xf32>
    %c0_1 = arith.constant 0 : index
    %c0_2 = arith.constant 0 : index
    %1 = vector.load %arg2[%c0_1, %c0_2] : memref<8x8xf32, #tpu.memory_space<vmem>>, vector<8x8xf32>
    %c0_3 = arith.constant 0 : index
    %c0_4 = arith.constant 0 : index
    %c0_5 = arith.constant 0 : index
    %2 = vector.load %arg3[%c0_3, %c0_4, %c0_5] : memref<8x8x16xf32, #tpu.memory_space<vmem>>, vector<8x8x16xf32>
    %c0_6 = arith.constant 0 : index
    %c0_7 = arith.constant 0 : index
    %3 = vector.load %arg4[%c0_6, %c0_7] : memref<8x8xf32, #tpu.memory_space<vmem>>, vector<8x8xf32>
    %c0_8 = arith.constant 0 : index
    %c0_9 = arith.constant 0 : index
    %4 = vector.load %arg5[%c0_8, %c0_9] : memref<1x16xf32, #tpu.memory_space<vmem>>, vector<1x16xf32>
    %5 = vector.shape_cast %0 : vector<8x16xf32> to vector<8x1x16xf32>
    %6 = vector.broadcast %5 : vector<8x1x16xf32> to vector<8x8x16xf32>
    %7 = arith.mulf %2, %6 : vector<8x8x16xf32>
    %cst = arith.constant dense<0.000000e+00> : vector<8x8xf32>
    %8 = vector.multi_reduction <add>, %7, %cst [2] : vector<8x8x16xf32> to vector<8x8xf32>
    %9 = vector.shape_cast %1 : vector<8x8xf32> to vector<8x8x1xf32>
    %10 = vector.broadcast %9 : vector<8x8x1xf32> to vector<8x8x16xf32>
    %11 = arith.mulf %2, %10 : vector<8x8x16xf32>
    %cst_10 = arith.constant dense<0.000000e+00> : vector<8x16xf32>
    %12 = vector.multi_reduction <add>, %11, %cst_10 [1] : vector<8x8x16xf32> to vector<8x16xf32>
    %13 = arith.subf %8, %3 : vector<8x8xf32>
    %cst_11 = arith.constant 0.000000e+00 : f32
    %14 = vector.broadcast %cst_11 : f32 to vector<8x8xf32>
    %15 = arith.maximumf %13, %14 : vector<8x8xf32>
    %16 = arith.mulf %15, %15 : vector<8x8xf32>
    %cst_12 = arith.constant dense<0.000000e+00> : vector<8xf32>
    %17 = vector.multi_reduction <add>, %16, %cst_12 [1] : vector<8x8xf32> to vector<8xf32>
    %cst_13 = arith.constant 8.000000e+00 : f32
    %18 = vector.broadcast %cst_13 : f32 to vector<8xf32>
    %19 = arith.divf %17, %18 : vector<8xf32>
    %cst_14 = arith.constant 0.000000e+00 : f32
    %20 = vector.broadcast %cst_14 : f32 to vector<8x8xf32>
    %21 = arith.subf %20, %1 : vector<8x8xf32>
    %cst_15 = arith.constant 0.000000e+00 : f32
    %22 = vector.broadcast %cst_15 : f32 to vector<8x8xf32>
    %23 = arith.maximumf %21, %22 : vector<8x8xf32>
    %24 = arith.mulf %23, %23 : vector<8x8xf32>
    %cst_16 = arith.constant dense<0.000000e+00> : vector<8xf32>
    %25 = vector.multi_reduction <add>, %24, %cst_16 [1] : vector<8x8xf32> to vector<8xf32>
    %cst_17 = arith.constant 8.000000e+00 : f32
    %26 = vector.broadcast %cst_17 : f32 to vector<8xf32>
    %27 = arith.divf %25, %26 : vector<8xf32>
    %28 = vector.broadcast %4 : vector<1x16xf32> to vector<8x16xf32>
    %29 = arith.addf %28, %12 : vector<8x16xf32>
    %30 = arith.mulf %29, %29 : vector<8x16xf32>
    %cst_18 = arith.constant dense<0.000000e+00> : vector<8xf32>
    %31 = vector.multi_reduction <add>, %30, %cst_18 [1] : vector<8x16xf32> to vector<8xf32>
    %cst_19 = arith.constant 1.600000e+01 : f32
    %32 = vector.broadcast %cst_19 : f32 to vector<8xf32>
    %33 = arith.divf %31, %32 : vector<8xf32>
    %34 = arith.mulf %1, %13 : vector<8x8xf32>
    %35 = arith.mulf %34, %34 : vector<8x8xf32>
    %cst_20 = arith.constant dense<0.000000e+00> : vector<8xf32>
    %36 = vector.multi_reduction <add>, %35, %cst_20 [1] : vector<8x8xf32> to vector<8xf32>
    %cst_21 = arith.constant 8.000000e+00 : f32
    %37 = vector.broadcast %cst_21 : f32 to vector<8xf32>
    %38 = arith.divf %36, %37 : vector<8xf32>
    %cst_22 = arith.constant 1.000000e-01 : f32
    %39 = vector.broadcast %cst_22 : f32 to vector<8xf32>
    %40 = arith.mulf %39, %19 : vector<8xf32>
    %cst_23 = arith.constant 1.000000e-01 : f32
    %41 = vector.broadcast %cst_23 : f32 to vector<8xf32>
    %42 = arith.mulf %41, %27 : vector<8xf32>
    %43 = arith.addf %40, %42 : vector<8xf32>
    %cst_24 = arith.constant 6.000000e-01 : f32
    %44 = vector.broadcast %cst_24 : f32 to vector<8xf32>
    %45 = arith.mulf %44, %33 : vector<8xf32>
    %46 = arith.addf %43, %45 : vector<8xf32>
    %cst_25 = arith.constant 2.000000e-01 : f32
    %47 = vector.broadcast %cst_25 : f32 to vector<8xf32>
    %48 = arith.mulf %47, %38 : vector<8xf32>
    %49 = arith.addf %46, %48 : vector<8xf32>
    %50 = vector.shape_cast %49 : vector<8xf32> to vector<1x1x8xf32>
    %c0_26 = arith.constant 0 : index
    %c0_27 = arith.constant 0 : index
    %c0_28 = arith.constant 0 : index
    %51 = vector.load %arg6[%c0_26, %c0_27, %c0_28] : memref<1x1x8xf32, #tpu.memory_space<vmem>>, vector<1x1x8xf32>
    tpu.vector_store %arg6[%c0_26, %c0_27, %c0_28], %50 {strides = array<i32>} : memref<1x1x8xf32, #tpu.memory_space<vmem>>, vector<1x1x8xf32>,
    return
  }
  func.func @transform_0(%arg0: i32) -> (i32, i32) {
    %c0_i32 = arith.constant 0 : i32
    %c0_i32_0 = arith.constant 0 : i32
    return %arg0, %c0_i32 : i32, i32
  }
  func.func @transform_1(%arg0: i32) -> (i32, i32) {
    %c0_i32 = arith.constant 0 : i32
    %c0_i32_0 = arith.constant 0 : i32
    return %arg0, %c0_i32 : i32, i32
  }
  func.func @transform_2(%arg0: i32) -> (i32, i32, i32) {
    %c0_i32 = arith.constant 0 : i32
    %c0_i32_0 = arith.constant 0 : i32
    %c0_i32_1 = arith.constant 0 : i32
    return %arg0, %c0_i32, %c0_i32_0 : i32, i32, i32
  }
  func.func @transform_3(%arg0: i32) -> (i32, i32) {
    %c0_i32 = arith.constant 0 : i32
    %c0_i32_0 = arith.constant 0 : i32
    return %arg0, %c0_i32 : i32, i32
  }
  func.func @transform_4(%arg0: i32) -> (i32, i32) {
    %c0_i32 = arith.constant 0 : i32
    %c0_i32_0 = arith.constant 0 : i32
    %c0_i32_1 = arith.constant 0 : i32
    return %c0_i32, %c0_i32_0 : i32, i32
  }
  func.func @transform_5(%arg0: i32) -> (i32, i32, i32) {
    %c0_i32 = arith.constant 0 : i32
    %c0_i32_0 = arith.constant 0 : i32
    %c0_i32_1 = arith.constant 0 : i32
    return %arg0, %c0_i32, %c0_i32_0 : i32, i32, i32
  }
}

</mosaic_0001>

<bundles_post_ra>
// kernel: tpu_custom_call.1
= control target key start
LH: loop header
LB: loop body
LE: loop exit
PB: predicated region body
PF: predicated region fallthrough
CT: control target
= control target key end

     0   :  { %10 = vsyncpa [#allocation3], 0  ;;  %s960_s0 = inlined_call_operand.hbm [shape: f32[8,16], index: 0, kind: input, shape index: {}]   ;;  %s961_s1 = inlined_call_operand.hbm [shape: f32[8,8], index: 1, kind: input, shape index: {}]   ;;  %s962_s2 = inlined_call_operand.hbm [shape: f32[8,8,16], index: 2, kind: input, shape index: {}]   ;;  %s963_s3 = inlined_call_operand.vmem [shape: f32[8,8], index: 3, kind: input, shape index: {}]   ;;  %s964_s4 = inlined_call_operand.vmem [shape: f32[1,16], index: 4, kind: input, shape index: {}]   ;;  %s965_s5 = inlined_call_operand.hbm [shape: f32[1,1,8], index: 5, kind: output, shape index: {}]  }
   0x1   :  { %11 = vsyncpa [#allocation6], 0 }
   0x2   :  { %12 = vsyncpa [#allocation4], 0  ;;  %s740_s18 = smov [#allocation5]   ;;  %s741_s20 = smov [#allocation2]  }
   0x3   :  { %s29_s19 = sshll.u32 %s740_s18, 4  ;;  %s19_s21 = sshll.u32 %s741_s20, 4  ;;  %s30_s19 = int_to_ptr.vmem [resolvable:$true] %s29_s19  ;;  %s20_s21 = int_to_ptr.vmem [resolvable:$true] %s19_s21 }
   0x4   :  { %s646_s24 = scalar_lea.hbm %s961_s1, 128 }
   0x5   :  { %p647_p0 = scmp.ne.s32.totalorder %s961_s1, %s646_s24  ;;  %p650_p1 = scmp.lt.u32.totalorder %s646_s24, %s961_s1 }
   0x7   :  { %p652_p2 = pnand %p650_p1, %p647_p0 }
   0x9   :  { %655 = shalt.err (!%p652_p2)
}
   0xa   :  { %s656_s29 = scalar_lea.vmem %s30_s19, 128  ;;  %p661_p4 = scmp.lt.s32.totalorder %s30_s19, %s30_s19 }
   0xb   :  { %p657_p3 = scmp.ne.s32.totalorder %s30_s19, %s656_s29  ;;  %p662_p5 = scmp.lt.s32.totalorder %s656_s29, %s656_s29 }
   0xd   :  { %p663_p6 = por %p662_p5, %p661_p4 }
   0xf   :  { %p664_p7 = pnand %p663_p6, %p657_p3 }
  0x11   :  { %667 = shalt.err (!%p664_p7)
}
  0x12   :  { %32 = dma.hbm_to_vmem [thread:$0]  %s961_s1, 128, %s30_s19, [#allocation6]  }
  0x13   :  { %s668_s9 = scalar_lea.hbm %s960_s0, 128 }
  0x14   :  { %p669_p8 = scmp.ne.s32.totalorder %s960_s0, %s668_s9  ;;  %p672_p9 = scmp.lt.u32.totalorder %s668_s9, %s960_s0 }
  0x16   :  { %p674_p10 = pnand %p672_p9, %p669_p8 }
  0x18   :  { %677 = shalt.err (!%p674_p10)
}
  0x19   :  { %s678_s14 = scalar_lea.vmem %s20_s21, 128  ;;  %p683_p12 = scmp.lt.s32.totalorder %s20_s21, %s20_s21 }
  0x1a   :  { %p679_p11 = scmp.ne.s32.totalorder %s20_s21, %s678_s14  ;;  %p684_p13 = scmp.lt.s32.totalorder %s678_s14, %s678_s14 }
  0x1c   :  { %p685_p0 = por %p684_p13, %p683_p12 }
  0x1e   :  { %p686_p1 = pnand %p685_p0, %p679_p11 }
  0x20   :  { %689 = shalt.err (!%p686_p1)
}
  0x21   :  { %22 = dma.hbm_to_vmem [thread:$0]  %s960_s0, 128, %s20_s21, [#allocation3]  }
  0x22   :  { %s742_s16 = smov [#allocation7]   ;;  %s690_s20 = scalar_lea.hbm %s962_s2, 1024 }
  0x23   :  { %s38_s17 = sshll.u32 %s742_s16, 4  ;;  %p691_p2 = scmp.ne.s32.totalorder %s962_s2, %s690_s20  ;;  %s39_s17 = int_to_ptr.vmem [resolvable:$true] %s38_s17 }
  0x24   :  { %p694_p3 = scmp.lt.u32.totalorder %s690_s20, %s962_s2 }
  0x26   :  { %p696_p4 = pnand %p694_p3, %p691_p2 }
  0x28   :  { %699 = shalt.err (!%p696_p4)
}
  0x29   :  { %s700_s26 = scalar_lea.vmem %s39_s17, 1024  ;;  %p705_p6 = scmp.lt.s32.totalorder %s39_s17, %s39_s17 }
  0x2a   :  { %p701_p5 = scmp.ne.s32.totalorder %s39_s17, %s700_s26  ;;  %p706_p7 = scmp.lt.s32.totalorder %s700_s26, %s700_s26 }
  0x2c   :  { %p707_p8 = por %p706_p7, %p705_p6 }
  0x2e   :  { %p708_p9 = pnand %p707_p8, %p701_p5 }
  0x30   :  { %711 = shalt.err (!%p708_p9)
}
  0x31   :  { %s743_s0 = smov 128   ;;  %s744_s21 = smov 8  }
  0x32   :  { %44 = dma.hbm_to_vmem [thread:$0]  %s962_s2, 1024, %s39_s17, [#allocation6], %s743_s0, %s743_s0, %s744_s21  }
  0x33   :  { %734 = dma.done.wait [#allocation3], 128  }
  0x34   :  { %735 = vsyncadd [#allocation3], 4294967168 }
  0x35   :  { %736 = dma.done.wait [#allocation6], 1152  }
  0x36   :  { %737 = vsyncadd [#allocation6], 4294966144  ;;  %v75_v0 = vlaneseq  ;;  %v745_v1 = vmov 1966171168   ;;  %v58_v8 = vld [vmem:[#allocation2] sm:$0xff]  ;;  %v823_v15 = vld [vmem:[#allocation7] sm:$0xff] }
  0x37   :  { %v73_v2 = vunpack.c.l.s4 %v745_v1  ;;  %v71_v11 = vcombine.high %v58_v8, %v58_v8  ;;  %vm168_vm0 = vcmask 130048   ;;  %v826_v20 = vld [vmem:[#allocation7 + $0x10] sm:$0xff]  ;;  %v828_v21 = vld [vmem:[#allocation7 + $0x8] sm:$0xff]  ;;  %v833_v27 = vld [vmem:[#allocation7 + $0x20] sm:$0xff]  ;;  %v746_v63 = vmov 0  }
  0x38   :  { %v814_v3 = vshrl.u32 %v75_v0, 7  ;;  %v435_v4 = vand.u32 127, %v75_v0  ;;  %v835_v28 = vld [vmem:[#allocation7 + $0x18] sm:$0xff]  ;;  %v843_v37 = vld [vmem:[#allocation7 + $0x28] sm:$0xff]  ;;  %v850_v44 = vld [vmem:[#allocation7 + $0x30] sm:$0xff]  ;;  %644 = vset.pattern.permute.xlu0 %v746_v63  ;;  %643 = vset.pattern.permute.xlu1 %v746_v63  ;;  %vm468_vm1 = vcmask 1041409  }
  0x39   :  { %v74_v5 = vunpack.c.0.s8 %v73_v2  ;;  %v855_v48 = vld [vmem:[#allocation7 + $0x38] sm:$0xff]  ;;  %v68_v56 = vld [vmem:[%s963_s3] sm:$0xff]  ;;  %vm470_vm2 = vcmask 1042434   ;;  %vm472_vm3 = vcmask 1043459   ;;  %vm474_vm4 = vcmask 1044484  }
  0x3a   :  { %v817_v6 = vsub.s32 %v435_v4, %v814_v3  ;;  %v821_v10 = vsub.s32 0, %v814_v3  ;;  %v202_v55 = vsub.s32 1, %v814_v3  ;;  %v209_v58 = vsub.s32 2, %v814_v3 }
  0x3b   :  { %v77_v7 = vsub.s32 %v74_v5, %v814_v3  ;;  %v223_v60 = vsub.s32 4, %v814_v3  ;;  %v216_v62 = vsub.s32 3, %v814_v3  ;;  %v237_v1 = vsub.s32 6, %v814_v3 }
  0x3c   :  { %v324_v57 = vrot.slane %v68_v56, %v202_v55  ;;  %v317_v59 = vrot.slane %v68_v56, %v821_v10  ;;  %v331_v61 = vrot.slane %v68_v56, %v209_v58  ;;  %v230_v4 = vsub.s32 5, %v814_v3 }
  0x3d   :  { %v78_v9 = vrot.slane %v58_v8, %v77_v7  ;;  %v85_v14 = vrot.slane %v71_v11, %v77_v7  ;;  %v345_v0 = vrot.slane %v68_v56, %v223_v60  ;;  %v338_v2 = vrot.slane %v68_v56, %v216_v62 }
  0x3e   :  { %v359_v5 = vrot.slane %v68_v56, %v237_v1  ;;  %v244_v8 = vsub.s32 7, %v814_v3  ;;  %vm476_vm5 = vcmask 1045509   ;;  %vm478_vm6 = vcmask 1046534  }
  0x3f   :  { %v94_v12 = vrot.slane %v78_v9, %v77_v7  ;;  %v86_v13 = vcombine.high %v78_v9, %v78_v9  ;;  %v101_v19 = vrot.slane %v85_v14, %v77_v7  ;;  %v87_v22 = vcombine.high %v85_v14, %v85_v14  ;;  %v874_v9 = vld [vmem:[#allocation5] sm:$0xff] }
  0x40   :  { %v196_v11 = vrot.slane %v874_v9, %v821_v10  ;;  %v203_v14 = vrot.slane %v874_v9, %v202_v55  ;;  %v217_v3 = vrot.slane %v874_v9, %v216_v62  ;;  %vm480_vm7 = vcmask 1047559  }
  0x41   :  { %v123_v16 = vrot.slane %v94_v12, %v821_v10  ;;  %v116_v17 = vcombine.high %v94_v12, %v94_v12  ;;  %v108_v18 = vrot.slane %v86_v13, %v77_v7  ;;  %v139_v29 = vrot.slane %v101_v19, %v821_v10 }
  0x42   :  { %v115_v30 = vrot.slane %v87_v22, %v77_v7  ;;  %v117_v31 = vcombine.high %v101_v19, %v101_v19  ;;  %v352_v7 = vrot.slane %v68_v56, %v230_v4  ;;  %v366_v12 = vrot.slane %v68_v56, %v244_v8 }
  0x43   :  { %v160_v23 = vmul.f32 %v123_v16, %v823_v15  ;;  %v131_v24 = vrot.slane %v116_v17, %v821_v10  ;;  %v127_v25 = vrot.slane %v108_v18, %v821_v10  ;;  %v118_v26 = vcombine.high %v108_v18, %v108_v18 }
  0x44   :  { %v164_v36 = vmul.f32 %v139_v29, %v833_v27  ;;  %v143_v38 = vrot.slane %v115_v30, %v821_v10  ;;  %v119_v39 = vcombine.high %v115_v30, %v115_v30  ;;  %v147_v43 = vrot.slane %v117_v31, %v821_v10 }
  0x45   :  { %v169_v32 = vsel %vm168_vm0, %v160_v23, 0.0  ;;  %v162_v33 = vmul.f32 %v131_v24, %v826_v20  ;;  %v161_v34 = vmul.f32 %v127_v25, %v828_v21  ;;  %v135_v35 = vrot.slane %v118_v26, %v821_v10 }
  0x46   :  { %170 = vadd.xlane.f32.xlu0 %v169_v32  ;;  %v165_v46 = vmul.f32 %v143_v38, %v843_v37  ;;  %v151_v47 = vrot.slane %v119_v39, %v821_v10  ;;  %v181_v49 = vsel %vm168_vm0, %v164_v36, 0.0  ;;  %v166_v50 = vmul.f32 %v147_v43, %v850_v44 }
  0x47   :  { %v175_v40 = vsel %vm168_vm0, %v162_v33, 0.0  ;;  %v172_v41 = vsel %vm168_vm0, %v161_v34, 0.0  ;;  %v163_v42 = vmul.f32 %v135_v35, %v835_v28  ;;  %v210_v13 = vrot.slane %v874_v9, %v209_v58 }
  0x48   :  { %176 = vadd.xlane.f32.xlu1 %v175_v40  ;;  %v184_v51 = vsel %vm168_vm0, %v165_v46, 0.0  ;;  %v167_v52 = vmul.f32 %v151_v47, %v855_v48  ;;  %v187_v53 = vsel %vm168_vm0, %v166_v50, 0.0  ;;  %v224_v16 = vrot.slane %v874_v9, %v223_v60 }
  0x49   :  { %v178_v45 = vsel %vm168_vm0, %v163_v42, 0.0  ;;  %v238_v17 = vrot.slane %v874_v9, %v237_v1  ;;  %v231_v10 = vrot.slane %v874_v9, %v230_v4  ;;  %v245_v18 = vrot.slane %v874_v9, %v244_v8 }
  0x4a   :  { %173 = vadd.xlane.f32.xlu0 %v172_v41  ;;  %v190_v54 = vsel %vm168_vm0, %v167_v52, 0.0  ;;  %vm483_vm8 = vcmask 64512   ;;  %vm616_vm9 = vcmask 57344  }
  0x4c   :  { %179 = vadd.xlane.f32.xlu1 %v178_v45 }
  0x4e   :  { %182 = vadd.xlane.f32.xlu0 %v181_v49 }
  0x50   :  { %185 = vadd.xlane.f32.xlu1 %v184_v51 }
  0x52   :  { %188 = vadd.xlane.f32.xlu0 %v187_v53 }
  0x54   :  { %191 = vadd.xlane.f32.xlu1 %v190_v54 }
  0x65   :  { %326 = vbcast.lane.b32.xlu1 %v324_v57, 256 }
  0x68   :  { %319 = vbcast.lane.b32.xlu0 %v317_v59, 256 }
  0x69   :  { %333 = vbcast.lane.b32.xlu1 %v331_v61, 256 }
  0x6c   :  { %347 = vbcast.lane.b32.xlu0 %v345_v0, 256 }
  0x6d   :  { %340 = vbcast.lane.b32.xlu1 %v338_v2, 256 }
  0x70   :  { %361 = vbcast.lane.b32.xlu0 %v359_v5, 256 }
  0x71   :  { %354 = vbcast.lane.b32.xlu1 %v352_v7, 256 }
  0x74   :  { %198 = vbcast.lane.b32.xlu0 %v196_v11, 256 }
  0x75   :  { %368 = vbcast.lane.b32.xlu1 %v366_v12, 256 }
  0x78   :  { %212 = vbcast.lane.b32.xlu0 %v210_v13, 256 }
  0x79   :  { %205 = vbcast.lane.b32.xlu1 %v203_v14, 256 }
  0x7c   :  { %226 = vbcast.lane.b32.xlu0 %v224_v16, 256 }
  0x7d   :  { %219 = vbcast.lane.b32.xlu1 %v217_v3, 256 }
  0x80   :  { %240 = vbcast.lane.b32.xlu0 %v238_v17, 256 }
  0x81   :  { %233 = vbcast.lane.b32.xlu1 %v231_v10, 256 }
  0x85   :  { %247 = vbcast.lane.b32.xlu1 %v245_v18, 256 }
  0xd3   :  { %v171_v19 = vpop.xlane.xlu0 %170 }
  0xd5   :  { %v177_v22 = vpop.xlane.xlu1 %176 }
  0xd7   :  { %v174_v23 = vpop.xlane.xlu0 %173 }
  0xd9   :  { %v180_v24 = vpop.xlane.xlu1 %179 }
  0xdb   :  { %v183_v25 = vpop.xlane.xlu0 %182 }
  0xdd   :  { %v186_v26 = vpop.xlane.xlu1 %185 }
  0xdf   :  { %v189_v29 = vpop.xlane.xlu0 %188 }
  0xe1   :  { %v192_v30 = vpop.xlane.xlu1 %191 }
  0xe3   :  { %v320_v31 = vpop.permute.xlu0 %319 }
  0xe4   :  { %v378_v32 = vsub.f32 %v171_v19, %v320_v31 }
  0xe5   :  { %v327_v33 = vpop.permute.xlu1 %326 }
  0xe6   :  { %v379_v34 = vsub.f32 %v174_v23, %v327_v33  ;;  %534 = vperm.xlu1 %643, %v378_v32   ;;  %v386_v45 = vmax.f32 %v378_v32, 0.0 }
  0xe7   :  { %v348_v35 = vpop.permute.xlu0 %347 }
  0xe8   :  { %v387_v36 = vmax.f32 %v379_v34, 0.0  ;;  %537 = vperm.xlu0 %644, %v379_v34   ;;  %v382_v40 = vsub.f32 %v183_v25, %v348_v35  ;;  %v394_v53 = vmul.f32 %v386_v45, %v386_v45 }
  0xe9   :  { %v334_v38 = vpop.permute.xlu1 %333 }
  0xea   :  { %v395_v39 = vmul.f32 %v387_v36, %v387_v36  ;;  %v380_v41 = vsub.f32 %v177_v22, %v334_v38  ;;  %v390_v47 = vmax.f32 %v382_v40, 0.0 }
  0xeb   :  { %v362_v42 = vpop.permute.xlu0 %361 }
  0xec   :  { %v388_v43 = vmax.f32 %v380_v41, 0.0  ;;  %414 = vperm.xlu1 %643, %v395_v39   ;;  %540 = vperm.xlu0 %644, %v380_v41   ;;  %v398_v55 = vmul.f32 %v390_v47, %v390_v47  ;;  %v384_v62 = vsub.f32 %v189_v29, %v362_v42 }
  0xed   :  { %v341_v46 = vpop.permute.xlu1 %340 }
  0xee   :  { %v396_v49 = vmul.f32 %v388_v43, %v388_v43  ;;  %v381_v50 = vsub.f32 %v180_v24, %v341_v46  ;;  %v392_v8 = vmax.f32 %v384_v62, 0.0 }
  0xef   :  { %v199_v51 = vpop.permute.xlu0 %198 }
  0xf0   :  { %546 = vperm.xlu0 %644, %v382_v40   ;;  %417 = vperm.xlu1 %643, %v396_v49   ;;  %v249_v52 = vmul.f32 %v199_v51, %v823_v15  ;;  %v389_v56 = vmax.f32 %v381_v50, 0.0 }
  0xf1   :  { %v355_v54 = vpop.permute.xlu1 %354 }
  0xf2   :  { %v383_v57 = vsub.f32 %v186_v26, %v355_v54  ;;  %v257_v58 = vsel %vm168_vm0, %v249_v52, 0.0  ;;  %v397_v1 = vmul.f32 %v389_v56, %v389_v56 }
  0xf3   :  { %v258_v59 = vrot.slane %v257_v58, 4  ;;  %v213_v60 = vpop.permute.xlu0 %212 }
  0xf4   :  { %411 = vperm.xlu0 %644, %v394_v53   ;;  %423 = vperm.xlu1 %643, %v398_v55   ;;  %v251_v61 = vmul.f32 %v213_v60, %v826_v20  ;;  %v391_v2 = vmax.f32 %v383_v57, 0.0 }
  0xf5   :  { %v369_v63 = vpop.permute.xlu1 %368  ;;  %v259_v0 = vadd.f32 %v258_v59, %v257_v58 }
  0xf6   :  { %v271_v15 = vsel %vm168_vm0, %v251_v61, 0.0  ;;  %v399_v14 = vmul.f32 %v391_v2, %v391_v2  ;;  %v385_v16 = vsub.f32 %v192_v30, %v369_v63 }
  0xf7   :  { %v272_v4 = vrot.slane %v271_v15, 4  ;;  %v227_v5 = vpop.permute.xlu0 %226  ;;  %v260_v11 = vrot.slane %v259_v0, 2 }
  0xf8   :  { %543 = vperm.xlu0 %644, %v381_v50   ;;  %420 = vperm.xlu1 %643, %v397_v1   ;;  %v253_v7 = vmul.f32 %v227_v5, %v833_v27  ;;  %v400_v27 = vmul.f32 %v392_v8, %v392_v8  ;;  %v393_v29 = vmax.f32 %v385_v16, 0.0 }
  0xf9   :  { %v206_v12 = vpop.permute.xlu1 %205  ;;  %v273_v13 = vadd.f32 %v272_v4, %v271_v15  ;;  %v261_v23 = vadd.f32 %v260_v11, %v259_v0 }
  0xfa   :  { %v250_v20 = vmul.f32 %v206_v12, %v828_v21  ;;  %v285_v3 = vsel %vm168_vm0, %v253_v7, 0.0  ;;  %v401_v40 = vmul.f32 %v393_v29, %v393_v29 }
  0xfb   :  { %v274_v17 = vrot.slane %v273_v13, 2  ;;  %v286_v10 = vrot.slane %v285_v3, 4  ;;  %v241_v18 = vpop.permute.xlu0 %240  ;;  %v262_v36 = vrot.slane %v261_v23, 1 }
  0xfc   :  { %549 = vperm.xlu0 %644, %v383_v57   ;;  %426 = vperm.xlu1 %643, %v399_v14   ;;  %v264_v19 = vsel %vm168_vm0, %v250_v20, 0.0  ;;  %v255_v22 = vmul.f32 %v241_v18, %v850_v44 }
  0xfd   :  { %v265_v24 = vrot.slane %v264_v19, 4  ;;  %v220_v25 = vpop.permute.xlu1 %219  ;;  %v287_v26 = vadd.f32 %v286_v10, %v285_v3  ;;  %v275_v30 = vadd.f32 %v274_v17, %v273_v13  ;;  %v263_v49 = vadd.f32 %v262_v36, %v261_v23 }
  0xfe   :  { %v252_v21 = vmul.f32 %v220_v25, %v835_v28  ;;  %v299_v31 = vsel %vm168_vm0, %v255_v22, 0.0  ;;  %v489_v10 = vsub.f32 0.0, %v874_v9 }
  0xff   :  { %v266_v32 = vadd.f32 %v265_v24, %v264_v19  ;;  %v300_v33 = vrot.slane %v299_v31, 4  ;;  %v288_v35 = vrot.slane %v287_v26, 2  ;;  %v276_v41 = vrot.slane %v275_v30, 1 }
 0x100   :  { %552 = vperm.xlu0 %644, %v384_v62   ;;  %429 = vperm.xlu1 %643, %v400_v27   ;;  %v278_v34 = vsel %vm168_vm0, %v252_v21, 0.0  ;;  %v490_v22 = vmax.f32 %v489_v10, 0.0  ;;  %v634_v27 = vld [vmem:[%s964_s4] ss:$0 sm:$0xff]  ;;  %s747_s4 = smov [#allocation8]  }
 0x101   :  { %v267_v44 = vrot.slane %v266_v32, 2  ;;  %v279_v38 = vrot.slane %v278_v34, 4  ;;  %v234_v39 = vpop.permute.xlu1 %233  ;;  %v301_v43 = vadd.f32 %v300_v33, %v299_v31  ;;  %v289_v46 = vadd.f32 %v288_v35, %v287_v26  ;;  %s624_s6 = sshll.u32 %s747_s4, 4  ;;  %s625_s6 = int_to_ptr.vmem [resolvable:$true] %s624_s6 }
 0x102   :  { %v254_v42 = vmul.f32 %v234_v39, %v843_v37  ;;  %v277_v54 = vadd.f32 %v276_v41, %v275_v30  ;;  %v491_v24 = vmul.f32 %v490_v22, %v490_v22  ;;  %s712_s7 = scalar_lea.vmem %s625_s6, 16  ;;  %s716_s8 = scalar_lea.vmem %s625_s6, 32 }
 0x103   :  { %v268_v45 = vadd.f32 %v267_v44, %v266_v32  ;;  %v280_v28 = vadd.f32 %v279_v38, %v278_v34  ;;  %v302_v55 = vrot.slane %v301_v43, 2  ;;  %v290_v59 = vrot.slane %v289_v46, 1  ;;  %p713_p10 = scmp.ne.s32.totalorder %s625_s6, %s712_s7  ;;  %p717_p11 = scmp.lt.s32.totalorder %s625_s6, %s625_s6 }
 0x104   :  { %555 = vperm.xlu0 %644, %v385_v16   ;;  %432 = vperm.xlu1 %643, %v401_v40   ;;  %v292_v47 = vsel %vm168_vm0, %v254_v42, 0.0  ;;  %v492_v26 = vsel %vm483_vm8, %v491_v24, 0.0  ;;  %p718_p12 = scmp.lt.s32.totalorder %s716_s8, %s712_s7 }
 0x105   :  { %v269_v50 = vrot.slane %v268_v45, 1  ;;  %v281_v51 = vrot.slane %v280_v28, 2  ;;  %v293_v52 = vrot.slane %v292_v47, 4  ;;  %v248_v53 = vpop.permute.xlu1 %247  ;;  %v303_v2 = vadd.f32 %v302_v55, %v301_v43 }
 0x106   :  { %v256_v56 = vmul.f32 %v248_v53, %v855_v48  ;;  %v291_v48 = vadd.f32 %v290_v59, %v289_v46  ;;  %p719_p13 = por %p718_p12, %p717_p11 }
 0x107   :  { %v270_v57 = vadd.f32 %v269_v50, %v268_v45  ;;  %v282_v37 = vadd.f32 %v281_v51, %v280_v28  ;;  %v294_v58 = vadd.f32 %v293_v52, %v292_v47  ;;  %v304_v12 = vrot.slane %v303_v2, 1 }
 0x108   :  { %v306_v60 = vsel %vm168_vm0, %v256_v56, 0.0  ;;  %p720_p0 = pnand %p719_p13, %p713_p10 }
 0x109   :  { %v510_v61 = vsel %vm468_vm1, %v270_v57, %v263_v49  ;;  %v283_v62 = vrot.slane %v282_v37, 1  ;;  %v295_v63 = vrot.slane %v294_v58, 2  ;;  %v307_v0 = vrot.slane %v306_v60, 4 }
 0x10a   :  { %v511_v1 = vsel %vm470_vm2, %v277_v54, %v510_v61  ;;  %v305_v3 = vadd.f32 %v304_v12, %v303_v2 }
 0x10b   :  { %v284_v15 = vadd.f32 %v283_v62, %v282_v37  ;;  %v296_v4 = vadd.f32 %v295_v63, %v294_v58  ;;  %v308_v5 = vadd.f32 %v307_v0, %v306_v60 }
 0x10d   :  { %v512_v7 = vsel %vm472_vm3, %v284_v15, %v511_v1  ;;  %v297_v8 = vrot.slane %v296_v4, 1  ;;  %v309_v11 = vrot.slane %v308_v5, 2 }
 0x10e   :  { %v513_v16 = vsel %vm474_vm4, %v291_v48, %v512_v7 }
 0x10f   :  { %v298_v13 = vadd.f32 %v297_v8, %v296_v4  ;;  %v310_v14 = vadd.f32 %v309_v11, %v308_v5 }
 0x111   :  { %v311_v20 = vrot.slane %v310_v14, 1  ;;  %v514_v17 = vsel %vm476_vm5, %v298_v13, %v513_v16 }
 0x112   :  { %v515_v19 = vsel %vm478_vm6, %v305_v3, %v514_v17 }
 0x113   :  { %v312_v18 = vadd.f32 %v311_v20, %v310_v14 }
 0x115   :  { %v516_v23 = vsel %vm480_vm7, %v312_v18, %v515_v19 }
 0x116   :  { %v518_v25 = vadd.f32 %v634_v27, %v516_v23 }
 0x118   :  { %v519_v29 = vmul.f32 %v518_v25, %v518_v25 }
 0x11a   :  { %v520_v30 = vsel %vm168_vm0, %v519_v29, 0.0 }
 0x123   :  { %493 = vadd.xlane.f32.xlu0 %v492_v26 }
 0x127   :  { %521 = vadd.xlane.f32.xlu0 %v520_v30 }
 0x165   :  { %v535_v21 = vpop.permute.xlu1 %534 }
 0x166   :  { %v560_v46 = vrot.slane %v535_v21, %v817_v6 }
 0x167   :  { %v538_v31 = vpop.permute.xlu0 %537 }
 0x168   :  { %v564_v41 = vrot.slane %v538_v31, %v817_v6 }
 0x16a   :  { %v589_v52 = vsel %vm468_vm1, %v564_v41, %v560_v46 }
 0x16b   :  { %v541_v32 = vpop.permute.xlu0 %540  ;;  %v415_v33 = vpop.permute.xlu1 %414 }
 0x16c   :  { %v443_v42 = vrot.slane %v415_v33, %v817_v6  ;;  %v568_v43 = vrot.slane %v541_v32, %v817_v6 }
 0x16e   :  { %v590_v53 = vsel %vm470_vm2, %v568_v43, %v589_v52 }
 0x16f   :  { %v547_v34 = vpop.permute.xlu0 %546  ;;  %v418_v35 = vpop.permute.xlu1 %417 }
 0x170   :  { %v447_v51 = vrot.slane %v418_v35, %v817_v6  ;;  %v576_v60 = vrot.slane %v547_v34, %v817_v6 }
 0x173   :  { %v412_v36 = vpop.permute.xlu0 %411  ;;  %v424_v44 = vpop.permute.xlu1 %423 }
 0x174   :  { %v439_v40 = vrot.slane %v412_v36, %v817_v6  ;;  %v455_v61 = vrot.slane %v424_v44, %v817_v6 }
 0x176   :  { %v469_v47 = vsel %vm468_vm1, %v443_v42, %v439_v40 }
 0x177   :  { %v544_v38 = vpop.permute.xlu0 %543  ;;  %v421_v39 = vpop.permute.xlu1 %420  ;;  %v471_v54 = vsel %vm470_vm2, %v447_v51, %v469_v47 }
 0x178   :  { %v572_v49 = vrot.slane %v544_v38, %v817_v6  ;;  %v451_v50 = vrot.slane %v421_v39, %v817_v6 }
 0x17a   :  { %v591_v57 = vsel %vm472_vm3, %v572_v49, %v590_v53  ;;  %v473_v37 = vsel %vm472_vm3, %v451_v50, %v471_v54 }
 0x17b   :  { %v550_v45 = vpop.permute.xlu0 %549  ;;  %v427_v28 = vpop.permute.xlu1 %426  ;;  %v592_v0 = vsel %vm474_vm4, %v576_v60, %v591_v57  ;;  %v475_v1 = vsel %vm474_vm4, %v455_v61, %v473_v37 }
 0x17c   :  { %v580_v58 = vrot.slane %v550_v45, %v817_v6  ;;  %v459_v59 = vrot.slane %v427_v28, %v817_v6 }
 0x17e   :  { %v593_v4 = vsel %vm476_vm5, %v580_v58, %v592_v0  ;;  %v477_v5 = vsel %vm476_vm5, %v459_v59, %v475_v1 }
 0x17f   :  { %v553_v55 = vpop.permute.xlu0 %552  ;;  %v430_v56 = vpop.permute.xlu1 %429 }
 0x180   :  { %v584_v62 = vrot.slane %v553_v55, %v817_v6  ;;  %v463_v63 = vrot.slane %v430_v56, %v817_v6 }
 0x182   :  { %v594_v8 = vsel %vm478_vm6, %v584_v62, %v593_v4  ;;  %v479_v11 = vsel %vm478_vm6, %v463_v63, %v477_v5 }
 0x183   :  { %v556_v2 = vpop.permute.xlu0 %555  ;;  %v433_v15 = vpop.permute.xlu1 %432 }
 0x184   :  { %v588_v48 = vrot.slane %v556_v2, %v817_v6  ;;  %v467_v7 = vrot.slane %v433_v15, %v817_v6 }
 0x186   :  { %v481_v12 = vsel %vm480_vm7, %v467_v7, %v479_v11  ;;  %v595_v13 = vsel %vm480_vm7, %v588_v48, %v594_v8 }
 0x187   :  { %v484_v14 = vsel %vm483_vm8, %v481_v12, 0.0  ;;  %v597_v16 = vmul.f32 %v595_v13, %v874_v9 }
 0x188   :  { %485 = vadd.xlane.f32.xlu1 %v484_v14 }
 0x189   :  { %v598_v20 = vmul.f32 %v597_v16, %v597_v16 }
 0x18b   :  { %v599_v3 = vsel %vm483_vm8, %v598_v20, 0.0 }
 0x18c   :  { %600 = vadd.xlane.f32.xlu0 %v599_v3 }
 0x1b0   :  { %v494_v17 = vpop.xlane.xlu0 %493 }
 0x1b1   :  { %v495_v18 = vmul.f32 0.125, %v494_v17 }
 0x1b3   :  { %v604_v23 = vmul.f32 0.1, %v495_v18 }
 0x1b4   :  { %v522_v10 = vpop.xlane.xlu0 %521 }
 0x1b5   :  { %v524_v22 = vmul.f32 0.0625, %v522_v10 }
 0x1b7   :  { %v606_v26 = vmul.f32 0.6, %v524_v22 }
 0x215   :  { %v486_v19 = vpop.xlane.xlu1 %485 }
 0x216   :  { %v488_v27 = vmul.f32 0.125, %v486_v19 }
 0x218   :  { %v603_v24 = vmul.f32 0.1, %v488_v27 }
 0x219   :  { %v601_v25 = vpop.xlane.xlu0 %600 }
 0x21a   :  { %v605_v29 = vadd.f32 %v604_v23, %v603_v24  ;;  %v602_v30 = vmul.f32 0.125, %v601_v25 }
 0x21c   :  { %v607_v21 = vadd.f32 %v606_v26, %v605_v29  ;;  %v608_v31 = vmul.f32 0.2, %v602_v30 }
 0x21e   :  { %v609_v9 = vadd.f32 %v608_v31, %v607_v21 }
 0x220   :  { %v614_v32 = vrot.slane %v609_v9, %v817_v6 }
 0x222   :  { %617 = vst.msk [vmem:[#allocation8] sm:$0x1] %vm616_vm9, %v614_v32 }
 0x223   :  { %723 = shalt.err (!%p720_p0)
}
 0x224   :  { %s724_s11 = scalar_lea.hbm %s965_s5, 16 }
 0x225   :  { %p725_p1 = scmp.ne.s32.totalorder %s965_s5, %s724_s11  ;;  %p728_p2 = scmp.lt.u32.totalorder %s724_s11, %s965_s5 }
 0x227   :  { %p730_p3 = pnand %p728_p2, %p725_p1 }
 0x229   :  { %733 = shalt.err (!%p730_p3)
}
 0x22a   :  { %627 = dma.vmem_to_hbm [thread:$0]  %s625_s6, 16, %s965_s5, [#allocation4]  }
 0x22b   :  { %738 = dma.done.wait [#allocation4], 16  }
 0x22c   :  { %739 = vsyncadd [#allocation4], 4294967280 }
 0x22d   :  { %631 = vsyncpa [#allocation3], 1 }
 0x22e   :  { %632 = vsyncpa [#allocation6], 1 }
 0x22f   :  { %633 = vsyncpa [#allocation4], 1 }

</bundles_post_ra>
